<compile_context>
chip_gen: v6e
topology: v6e:2x2x1
jax: 0.10.0
libtpu: 0.0.40
codegen_flags: <defaults>
</compile_context>

<pallas_src>
import jax
import jax.numpy as jnp
from jax.experimental import pallas as pl
from jax.experimental.pallas import tpu as pltpu


def _net_kernel(xT_ref, w1f_ref, b1f_ref, w2f_ref, b2f_ref,
                wn1s_ref, bn1_ref, wn2_ref, bn2_ref, out_ref):
    # xT_ref: (D, TB) bf16 — batch on the lane axis (lane-dense in and out).
    xT = xT_ref[...]

    # Fused rule+data encoder, layer 1:  (2H, D) @ (D, TB) -> (2H, TB)   [bf16 MXU, f32 acc]
    h1 = jnp.dot(w1f_ref[...], xT, preferred_element_type=jnp.float32) + b1f_ref[...]
    h1 = jnp.maximum(h1, 0.0)                                   # ReLU (f32 VPU)

    # Fused encoder layer 2, block-diagonal: (2E, 2H) @ (2H, TB) -> (2E, TB)
    # rows [0:E] == rule_z.T, rows [E:2E] == data_z.T  (i.e. the 'cat' already done)
    z = jnp.dot(w2f_ref[...], h1, preferred_element_type=jnp.float32) + b2f_ref[...]

    # merge='cat' + decision layer 0: alpha / (1-alpha) is folded into wn1s columns,
    # so a single dot replaces scale + cat + two dots.
    h = jnp.dot(wn1s_ref[...], z, preferred_element_type=jnp.float32) + bn1_ref[...]
    h = jnp.maximum(h, 0.0)                                     # ReLU

    # Decision layer 1 + sigmoid. exp -> EUP, approx reciprocal -> EUP (frees VALU).
    logits = jnp.dot(wn2_ref[...], h, preferred_element_type=jnp.float32) + bn2_ref[...]
    out_ref[...] = pl.reciprocal(1.0 + jnp.exp(-logits), approx=True)   # (out_dim, TB) lane-dense


def net_forward(x, params, alpha=0.0, block_b=512):
    """Pallas forward pass. x: (B, input_dim) f32. Returns (B, output_dim) f32."""
    f32 = jnp.float32
    B, D = x.shape
    H = params["wr1"].shape[1]
    E = params["wr2"].shape[1]
    out_dim = params["wn2"].shape[1]

    assert block_b % 128 == 0, "batch tile must be lane-aligned (multiple of 128)"
    n_blocks = pl.cdiv(B, block_b)
    B_pad = n_blocks * block_b

    # ---------- layout plumbing (tiny, per-call; weights are a few KiB) ----------
    # x: pad batch, put batch on the lane axis, bf16 for the streaming MXU operand.
    xT = jnp.pad(x, ((0, B_pad - B), (0, 0))).T.astype(jnp.bfloat16)          # (D, B_pad)

    # Fused encoder layer 1: [rule | data] stacked along the output (row) axis.
    w1f = jnp.concatenate([params["wr1"].T, params["wd1"].T], axis=0).astype(jnp.bfloat16)  # (2H, D)
    b1f = jnp.concatenate([params["br1"], params["bd1"]], axis=1).T.astype(f32)             # (2H, 1)

    # Fused encoder layer 2: block-diagonal [[wr2^T, 0], [0, wd2^T]].
    zEH = jnp.zeros((E, H), f32)
    w2f = jnp.concatenate(
        [jnp.concatenate([params["wr2"].T, zEH], axis=1),
         jnp.concatenate([zEH, params["wd2"].T], axis=1)], axis=0).astype(f32)              # (2E, 2H)
    b2f = jnp.concatenate([params["br2"], params["bd2"]], axis=1).T.astype(f32)             # (2E, 1)

    # merge='cat': fold the alpha / (1-alpha) scaling into decision-layer-0 columns.
    alpha = jnp.asarray(alpha, f32)
    scale = jnp.concatenate([jnp.broadcast_to(alpha, (E,)),
                             jnp.broadcast_to(1.0 - alpha, (E,))]).astype(f32)              # (2E,)
    wn1s = (params["wn1"].T * scale[None, :]).astype(f32)                                   # (dec, 2E)
    bn1 = params["bn1"].T.astype(f32)                                                       # (dec, 1)
    wn2 = params["wn2"].T.astype(f32)                                                       # (out, dec)
    bn2 = params["bn2"].T.astype(f32)                                                       # (out, 1)

    def resident(arr):  # weights: same block every step -> stay resident in VMEM
        return pl.BlockSpec(arr.shape, lambda i: (0, 0))

    out_t = pl.pallas_call(
        _net_kernel,
        out_shape=jax.ShapeDtypeStruct((out_dim, B_pad), f32),
        grid=(n_blocks,),
        in_specs=[
            pl.BlockSpec((D, block_b), lambda i: (0, i)),     # x tile: batch on lanes
            resident(w1f), resident(b1f),
            resident(w2f), resident(b2f),
            resident(wn1s), resident(bn1),
            resident(wn2), resident(bn2),
        ],
        out_specs=pl.BlockSpec((out_dim, block_b), lambda i: (0, i)),   # lane-dense store
        compiler_params=pltpu.CompilerParams(
            dimension_semantics=("parallel",)),               # megacore shard on v7x
    )(xT, w1f, b1f, w2f, b2f, wn1s, bn1, wn2, bn2)

    return out_t[:, :B].T                                      # (B, out_dim)


def init_params(key, input_dim, enc_hidden, enc_out, dec_hidden, output_dim):
    """Deterministic param init. Weights stored as (in, out) (transposed vs torch's
    (out, in)); biases as (1, out)."""
    ks = jax.random.split(key, 12)

    def lin(k_w, k_b, fan_in, fan_out):
        bound = 1.0 / jnp.sqrt(fan_in)
        w = jax.random.uniform(k_w, (fan_in, fan_out), jnp.float32, -bound, bound)
        b = jax.random.uniform(k_b, (1, fan_out), jnp.float32, -bound, bound)
        return w, b

    wr1, br1 = lin(ks[0], ks[1], input_dim, enc_hidden)
    wr2, br2 = lin(ks[2], ks[3], enc_hidden, enc_out)
    wd1, bd1 = lin(ks[4], ks[5], input_dim, enc_hidden)
    wd2, bd2 = lin(ks[6], ks[7], enc_hidden, enc_out)
    wn1, bn1 = lin(ks[8], ks[9], 2 * enc_out, dec_hidden)   # merge='cat' -> 2E input
    wn2, bn2 = lin(ks[10], ks[11], dec_hidden, output_dim)
    return dict(wr1=wr1, br1=br1, wr2=wr2, br2=br2,
                wd1=wd1, bd1=bd1, wd2=wd2, bd2=bd2,
                wn1=wn1, bn1=bn1, wn2=wn2, bn2=bn2)


def net_forward_ref(x, params, alpha=0.0):
    """Pure-JAX f32 reference matching the PyTorch forward (merge='cat', skip=False)."""
    def enc(w1, b1, w2, b2):
        return jnp.maximum(x @ w1 + b1, 0.0) @ w2 + b2
    rule_z = enc(params["wr1"], params["br1"], params["wr2"], params["br2"])
    data_z = enc(params["wd1"], params["bd1"], params["wd2"], params["bd2"])
    z = jnp.concatenate([alpha * rule_z, (1.0 - alpha) * data_z], axis=-1)
    h = jnp.maximum(z @ params["wn1"] + params["bn1"], 0.0)
    return jax.nn.sigmoid(h @ params["wn2"] + params["bn2"])


if __name__ == "__main__":
    # Small tabular shapes consistent with the module; B=256 with block_b=128 gives a
    # 2-step grid so the batch pipelining / parallel axis is actually exercised.
    B, INPUT_DIM, ENC_HIDDEN, ENC_OUT, DEC_HIDDEN, OUTPUT_DIM = 256, 16, 16, 8, 4, 1
    ALPHA = 0.3

    key = jax.random.PRNGKey(0)
    k_x, k_p = jax.random.split(key)
    x = jax.random.normal(k_x, (B, INPUT_DIM), dtype=jnp.float32)
    params = init_params(k_p, INPUT_DIM, ENC_HIDDEN, ENC_OUT, DEC_HIDDEN, OUTPUT_DIM)

    out = jax.block_until_ready(net_forward(x, params, alpha=ALPHA, block_b=128))
    ref = net_forward_ref(x, params, alpha=ALPHA)

    assert out.shape == (B, OUTPUT_DIM)
    # bf16 input quantization + approx reciprocal => loose-ish tolerance vs f32 ref.
    err = float(jnp.max(jnp.abs(out - ref)))
    assert jnp.allclose(out, ref, atol=2e-2, rtol=2e-2), f"max abs err {err}"
    print("KERNEL_OK")
</pallas_src>

<mosaic_0001>
module attributes {stable_mosaic.version = 11 : i64} {
  func.func @_net_kernel(%arg0: i32, %arg1: memref<16x128xbf16, #tpu.memory_space<vmem>>, %arg2: memref<32x16xbf16, #tpu.memory_space<vmem>>, %arg3: memref<32x1xf32, #tpu.memory_space<vmem>>, %arg4: memref<16x32xf32, #tpu.memory_space<vmem>>, %arg5: memref<16x1xf32, #tpu.memory_space<vmem>>, %arg6: memref<4x16xf32, #tpu.memory_space<vmem>>, %arg7: memref<4x1xf32, #tpu.memory_space<vmem>>, %arg8: memref<1x4xf32, #tpu.memory_space<vmem>>, %arg9: memref<1x1xf32, #tpu.memory_space<vmem>>, %arg10: memref<1x128xf32, #tpu.memory_space<vmem>>) attributes {dimension_semantics = [#tpu.dimension_semantics<parallel>], iteration_bounds = array<i64: 2>, scalar_prefetch = 0 : i64, scratch_operands = 0 : i64, tpu.core_type = #tpu.core_type<tc>, window_params = [{transform_indices = @transform_0, window_bounds = array<i64: 16, 128>}, {pipeline_mode = #tpu.pipeline_mode<synchronous>, transform_indices = @transform_1, window_bounds = array<i64: 32, 16>}, {pipeline_mode = #tpu.pipeline_mode<synchronous>, transform_indices = @transform_2, window_bounds = array<i64: 32, 1>}, {pipeline_mode = #tpu.pipeline_mode<synchronous>, transform_indices = @transform_3, window_bounds = array<i64: 16, 32>}, {pipeline_mode = #tpu.pipeline_mode<synchronous>, transform_indices = @transform_4, window_bounds = array<i64: 16, 1>}, {pipeline_mode = #tpu.pipeline_mode<synchronous>, transform_indices = @transform_5, window_bounds = array<i64: 4, 16>}, {pipeline_mode = #tpu.pipeline_mode<synchronous>, transform_indices = @transform_6, window_bounds = array<i64: 4, 1>}, {pipeline_mode = #tpu.pipeline_mode<synchronous>, transform_indices = @transform_7, window_bounds = array<i64: 1, 4>}, {pipeline_mode = #tpu.pipeline_mode<synchronous>, transform_indices = @transform_8, window_bounds = array<i64: 1, 1>}, {transform_indices = @transform_9, window_bounds = array<i64: 1, 128>}]} {
    %c0 = arith.constant 0 : index
    %c0_0 = arith.constant 0 : index
    %0 = vector.load %arg1[%c0, %c0_0] : memref<16x128xbf16, #tpu.memory_space<vmem>>, vector<16x128xbf16>
    %c0_1 = arith.constant 0 : index
    %c0_2 = arith.constant 0 : index
    %1 = vector.load %arg2[%c0_1, %c0_2] : memref<32x16xbf16, #tpu.memory_space<vmem>>, vector<32x16xbf16>
    %cst = arith.constant dense<0.000000e+00> : vector<32x128xf32>
    %2 = tpu.matmul %1, %0, %cst {dimension_numbers = #tpu.dot_dimension_numbers<[1], [0], [0], [1], [0, 0, 1, 1], [], []>} : vector<32x16xbf16>, vector<16x128xbf16>, vector<32x128xf32> -> vector<32x128xf32>
    %c0_3 = arith.constant 0 : index
    %c0_4 = arith.constant 0 : index
    %3 = vector.load %arg3[%c0_3, %c0_4] : memref<32x1xf32, #tpu.memory_space<vmem>>, vector<32x1xf32>
    %4 = vector.broadcast %3 : vector<32x1xf32> to vector<32x128xf32>
    %5 = arith.addf %2, %4 : vector<32x128xf32>
    %cst_5 = arith.constant 0.000000e+00 : f32
    %6 = vector.broadcast %cst_5 : f32 to vector<32x128xf32>
    %7 = arith.maximumf %5, %6 : vector<32x128xf32>
    %c0_6 = arith.constant 0 : index
    %c0_7 = arith.constant 0 : index
    %8 = vector.load %arg4[%c0_6, %c0_7] : memref<16x32xf32, #tpu.memory_space<vmem>>, vector<16x32xf32>
    %cst_8 = arith.constant dense<0.000000e+00> : vector<16x128xf32>
    %9 = tpu.matmul %8, %7, %cst_8 {dimension_numbers = #tpu.dot_dimension_numbers<[1], [0], [0], [1], [0, 0, 1, 1], [], []>} : vector<16x32xf32>, vector<32x128xf32>, vector<16x128xf32> -> vector<16x128xf32>
    %c0_9 = arith.constant 0 : index
    %c0_10 = arith.constant 0 : index
    %10 = vector.load %arg5[%c0_9, %c0_10] : memref<16x1xf32, #tpu.memory_space<vmem>>, vector<16x1xf32>
    %11 = vector.broadcast %10 : vector<16x1xf32> to vector<16x128xf32>
    %12 = arith.addf %9, %11 : vector<16x128xf32>
    %c0_11 = arith.constant 0 : index
    %c0_12 = arith.constant 0 : index
    %13 = vector.load %arg6[%c0_11, %c0_12] : memref<4x16xf32, #tpu.memory_space<vmem>>, vector<4x16xf32>
    %cst_13 = arith.constant dense<0.000000e+00> : vector<4x128xf32>
    %14 = tpu.matmul %13, %12, %cst_13 {dimension_numbers = #tpu.dot_dimension_numbers<[1], [0], [0], [1], [0, 0, 1, 1], [], []>} : vector<4x16xf32>, vector<16x128xf32>, vector<4x128xf32> -> vector<4x128xf32>
    %c0_14 = arith.constant 0 : index
    %c0_15 = arith.constant 0 : index
    %15 = vector.load %arg7[%c0_14, %c0_15] : memref<4x1xf32, #tpu.memory_space<vmem>>, vector<4x1xf32>
    %16 = vector.broadcast %15 : vector<4x1xf32> to vector<4x128xf32>
    %17 = arith.addf %14, %16 : vector<4x128xf32>
    %cst_16 = arith.constant 0.000000e+00 : f32
    %18 = vector.broadcast %cst_16 : f32 to vector<4x128xf32>
    %19 = arith.maximumf %17, %18 : vector<4x128xf32>
    %c0_17 = arith.constant 0 : index
    %c0_18 = arith.constant 0 : index
    %20 = vector.load %arg8[%c0_17, %c0_18] : memref<1x4xf32, #tpu.memory_space<vmem>>, vector<1x4xf32>
    %cst_19 = arith.constant dense<0.000000e+00> : vector<1x128xf32>
    %21 = tpu.matmul %20, %19, %cst_19 {dimension_numbers = #tpu.dot_dimension_numbers<[1], [0], [0], [1], [0, 0, 1, 1], [], []>} : vector<1x4xf32>, vector<4x128xf32>, vector<1x128xf32> -> vector<1x128xf32>
    %c0_20 = arith.constant 0 : index
    %c0_21 = arith.constant 0 : index
    %22 = vector.load %arg9[%c0_20, %c0_21] : memref<1x1xf32, #tpu.memory_space<vmem>>, vector<1x1xf32>
    %23 = vector.broadcast %22 : vector<1x1xf32> to vector<1x128xf32>
    %24 = arith.addf %21, %23 : vector<1x128xf32>
    %cst_22 = arith.constant 0.000000e+00 : f32
    %25 = vector.broadcast %cst_22 : f32 to vector<1x128xf32>
    %26 = arith.subf %25, %24 : vector<1x128xf32>
    %27 = math.exp %26 : vector<1x128xf32>
    %cst_23 = arith.constant 1.000000e+00 : f32
    %28 = vector.broadcast %cst_23 : f32 to vector<1x128xf32>
    %29 = arith.addf %28, %27 : vector<1x128xf32>
    %30 = tpu.reciprocal %29 {approx = true} : vector<1x128xf32> -> vector<1x128xf32>
    %c0_24 = arith.constant 0 : index
    %c0_25 = arith.constant 0 : index
    %31 = vector.load %arg10[%c0_24, %c0_25] : memref<1x128xf32, #tpu.memory_space<vmem>>, vector<1x128xf32>
    tpu.vector_store %arg10[%c0_24, %c0_25], %30 {strides = array<i32>} : memref<1x128xf32, #tpu.memory_space<vmem>>, vector<1x128xf32>,
    return
  }
  func.func @transform_0(%arg0: i32) -> (i32, i32) {
    %c0_i32 = arith.constant 0 : i32
    %c0_i32_0 = arith.constant 0 : i32
    return %c0_i32, %arg0 : i32, i32
  }
  func.func @transform_1(%arg0: i32) -> (i32, i32) {
    %c0_i32 = arith.constant 0 : i32
    %c0_i32_0 = arith.constant 0 : i32
    %c0_i32_1 = arith.constant 0 : i32
    return %c0_i32, %c0_i32_0 : i32, i32
  }
  func.func @transform_2(%arg0: i32) -> (i32, i32) {
    %c0_i32 = arith.constant 0 : i32
    %c0_i32_0 = arith.constant 0 : i32
    %c0_i32_1 = arith.constant 0 : i32
    return %c0_i32, %c0_i32_0 : i32, i32
  }
  func.func @transform_3(%arg0: i32) -> (i32, i32) {
    %c0_i32 = arith.constant 0 : i32
    %c0_i32_0 = arith.constant 0 : i32
    %c0_i32_1 = arith.constant 0 : i32
    return %c0_i32, %c0_i32_0 : i32, i32
  }
  func.func @transform_4(%arg0: i32) -> (i32, i32) {
    %c0_i32 = arith.constant 0 : i32
    %c0_i32_0 = arith.constant 0 : i32
    %c0_i32_1 = arith.constant 0 : i32
    return %c0_i32, %c0_i32_0 : i32, i32
  }
  func.func @transform_5(%arg0: i32) -> (i32, i32) {
    %c0_i32 = arith.constant 0 : i32
    %c0_i32_0 = arith.constant 0 : i32
    %c0_i32_1 = arith.constant 0 : i32
    return %c0_i32, %c0_i32_0 : i32, i32
  }
  func.func @transform_6(%arg0: i32) -> (i32, i32) {
    %c0_i32 = arith.constant 0 : i32
    %c0_i32_0 = arith.constant 0 : i32
    %c0_i32_1 = arith.constant 0 : i32
    return %c0_i32, %c0_i32_0 : i32, i32
  }
  func.func @transform_7(%arg0: i32) -> (i32, i32) {
    %c0_i32 = arith.constant 0 : i32
    %c0_i32_0 = arith.constant 0 : i32
    %c0_i32_1 = arith.constant 0 : i32
    return %c0_i32, %c0_i32_0 : i32, i32
  }
  func.func @transform_8(%arg0: i32) -> (i32, i32) {
    %c0_i32 = arith.constant 0 : i32
    %c0_i32_0 = arith.constant 0 : i32
    %c0_i32_1 = arith.constant 0 : i32
    return %c0_i32, %c0_i32_0 : i32, i32
  }
  func.func @transform_9(%arg0: i32) -> (i32, i32) {
    %c0_i32 = arith.constant 0 : i32
    %c0_i32_0 = arith.constant 0 : i32
    return %c0_i32, %arg0 : i32, i32
  }
}

</mosaic_0001>

<bundles_post_ra>
// kernel: tpu_custom_call.1
= control target key start
LH: loop header
LB: loop body
LE: loop exit
PB: predicated region body
PF: predicated region fallthrough
CT: control target
= control target key end

     0   :  { %s1212_s0 = inlined_call_operand.vmem [shape: bf16[16,256], index: 0, kind: input, shape index: {}]   ;;  %s1213_s1 = inlined_call_operand.vmem [shape: bf16[32,16], index: 1, kind: input, shape index: {}]   ;;  %s1214_s2 = inlined_call_operand.vmem [shape: f32[32,1], index: 2, kind: input, shape index: {}]   ;;  %s1215_s3 = inlined_call_operand.vmem [shape: f32[16,32], index: 3, kind: input, shape index: {}]   ;;  %s1216_s4 = inlined_call_operand.vmem [shape: f32[16,1], index: 4, kind: input, shape index: {}]   ;;  %s1217_s5 = inlined_call_operand.vmem [shape: f32[4,16], index: 5, kind: input, shape index: {}]   ;;  %s1218_s6 = inlined_call_operand.vmem [shape: f32[4,1], index: 6, kind: input, shape index: {}]   ;;  %s1219_s7 = inlined_call_operand.vmem [shape: f32[1,4], index: 7, kind: input, shape index: {}]   ;;  %s1220_s8 = inlined_call_operand.<no memory space> [shape: f32[1,1], index: 8, kind: input, shape index: {}]   ;;  %s1221_s9 = inlined_call_operand.hbm [shape: f32[1,256], index: 9, kind: output, shape index: {}]  }
   0x1   :  { %v14_v0 = vstv %s1220_s8 }
   0x2   :  { %15 = vst [vmem:[#allocation2] sm:$0x1] %v14_v0 }
   0x3   :  { %16 = vsyncpa [#allocation5], 0 }
   0x4   :  { %18 = vsyncpa [#allocation5 + $0x1], 0  ;;  %s1065_s11 = smov 0   ;;  %s1067_s12 = smov 0  }
   0x5   :  { %s1069_s13 = smov 0   ;;  %s1071_s14 = smov 0  }
   0x6 LB: > { %s831_s8 = sadd.s32 4294967295, %s1006_s14   ;;  %s832_s15 = sadd.s32 4294967294, %s1006_s14   ;;  %s1006_s14 = sphi %s1071_s14, %s1227_s14   ;;  %s1002_s13 = sphi %s1069_s13, %s1226_s13   ;;  %s998_s12 = sphi %s1067_s12, %s1225_s12   ;;  %s994_s11 = sphi %s1065_s11, %s1224_s11  }
   0x7   : > { %s1088_s16 = sadd.s32 1, %s1006_s14   ;;  %s31_s17 = sadd.s32 1, %s1002_s13 }
   0x8   : > { %s28_s18 = ssub.s32 %s1006_s14, %s1088_s16  ;;  %p38_p0 = scmp.ne.s32.totalorder %s1002_s13, %s998_s12 }
   0x9   : > { %p29_p1 = scmp.eq.s32.totalorder %s28_s18, 0  ;;  %p39_p2 = scmp.eq.s32.totalorder %s1006_s14, 0 }
   0xa   : > { %p236_p3 = scmp.eq.s32.totalorder %s831_s8, 1  ;;  %p241_p4 = scmp.ne.s32.totalorder %s998_s12, %s994_s11 }
   0xb   : > { %s1101_s19 = scalar_select %p29_p1, %s1002_s13, %s31_s17  }
   0xc   : > { %p40_p5 = por %p39_p2, %p38_p0  ;;  %p1103_p6 = por %p236_p3, %p38_p0 }
   0xd   : > { %p242_p7 = scmp.eq.s32.totalorder %s832_s15, 1  ;;  %p834_p9 = scmp.ge.s32.totalorder %s1006_s14, 2 }
   0xf   : > { %p1107_p8 = por %p242_p7, %p241_p4  ;;  %282 = sbr.rel (%p834_p9) target bundleno = 25 (0x19), region = 48 }
  0x14   : > { %285 = sbr.rel (!%p40_p5) target bundleno = 25 (0x19), region = 52  ;;  %s287_s22 = sand.u32 (%p40_p5), 1, %s1002_s13  }
  0x15   : > { %s836_s23 = sshll.u32 (%p40_p5), %s1006_s14, 2  ;;  %s835_s24 = sshll.u32 (%p40_p5), %s287_s22, 3 }
  0x16   : > { %s291_s27 = scalar_lea.vmem (%p40_p5), %s1212_s0, %s836_s23  ;;  %s289_s28 = scalar_lea.vmem (%p40_p5), [#allocation3], %s835_s24 }
  0x17   : > { %v308_v1 = vld [vmem:[%s291_s27] sm:$0xf] (%p40_p5)  ;;  %v310_v2 = vld [vmem:[%s291_s27 + $0x8] sm:$0xf] (%p40_p5) }
  0x18   : > { %309 = vst [vmem:[%s289_s28] sm:$0xf] (%p40_p5), %v308_v1  ;;  %311 = vst [vmem:[%s289_s28 + $0x4] sm:$0xf] (%p40_p5), %v310_v2 }
  0x19 PF: > { %p837_p10 = scmp.ge.s32.totalorder %s1006_s14, 1  ;;  %p338_p11 = scmp.lt.s32.totalorder %s1006_s14, 3 }
  0x1b   : > { %p339_p12 = pnand %p837_p10, %p338_p11 }
  0x1c   : > { %s1122_s29 = sand.u32 (!%p339_p12), 1, %s998_s12   ;;  %s849_s18 = sshll.u32 (!%p339_p12), %s831_s8, 4 }
  0x1d   : > { %342 = sbr.rel (%p339_p12) target bundleno = 888 (0x378), region = 93  ;;  %s838_s15 = sshll.u32 (!%p339_p12), %s1122_s29, 3 }
  0x1e   : > { %s347_s22 = scalar_lea.vmem (!%p339_p12), [#allocation3], %s838_s15  ;;  %s1175_s26 = scalar_lea.hbm (!%p339_p12), %s1221_s9, %s849_s18 }
  0x1f   : > { %s759_s27 = scalar_lea.sflag (!%p339_p12), [#allocation5], %s1122_s29  ;;  %s1011_s30 = smov (!%p339_p12), [#allocation4]  }
  0x20   : > { %s950_s10 = sshll.u32 (!%p339_p12), %s1011_s30, 4  ;;  %s951_s10 = int_to_ptr.vmem [resolvable:$false] %s950_s10 }
  0x21   : > { %s952_s8 = scalar_lea.vmem (!%p339_p12), %s951_s10, 32 }
  0x22   : > { %v940_v3 = vld [vmem:[%s1213_s1] sm:$0xff]   ;;  %vm426_vm0 = vcmask 130048   ;;  %v389_v4 = vld [vmem:[%s1214_s2 + $0x18] sm:$0xff]  ;;  %v1008_v6 = vmov 0   ;;  %v387_v7 = vld [vmem:[%s1214_s2 + $0x8] sm:$0xff]  ;;  %vm500_vm1 = vcmask 261120   ;;  %v670_v47 = vlaneseq }
  0x23   : > { %868 = vmatprep.mubr.msk.bf16.mxu0 %vm426_vm0, %v940_v3  ;;  %v939_v5 = vld [vmem:[%s347_s22] sm:$0xff]   ;;  %937 = vset.pattern.permute.xlu0 %v1008_v6  ;;  %v664_v14 = vld [vmem:[#allocation2] sm:$0x1]  ;;  %v1009_v33 = vmov 0.0   ;;  %vm1010_vm2 = vmmov 0   ;;  %vm678_vm3 = vcmask 1043456  }
  0x24   : > { %938 = vset.pattern.permute.xlu1 %v1008_v6  ;;  %407 = vperm.xlu0 %937, %v389_v4   ;;  %v941_v8 = vld [vmem:[%s1213_s1 + $0x8] sm:$0xff]   ;;  %v388_v9 = vld [vmem:[%s1214_s2 + $0x10] sm:$0xff]  ;;  %v386_v10 = vld [vmem:[%s1214_s2] sm:$0xff]  ;;  %vm674_vm4 = vcmask 31744   ;;  %v671_v48 = vshrl.u32 %v670_v47, 7  ;;  %s378_s22 = scalar_lea.vmem [#allocation4], %s1122_s29 }
  0x25   : > { %866 = vmatprep.subr.bf16.mxu0 %v939_v5  ;;  %397 = vperm.xlu1 %938, %v387_v7   ;;  %v489_v11 = vld [vmem:[%s1216_s4 + $0x8] sm:$0xff]  ;;  %v488_v12 = vld [vmem:[%s1216_s4] sm:$0xff]  ;;  %s771_s23 = sshll.u32 %s378_s22, 4  ;;  %s772_s23 = int_to_ptr.vmem [resolvable:$true] %s771_s23 }
  0x26   : > { %867 = vmatpush3.bf16.msra.mxu0 %v939_v5  ;;  %v583_v13 = vld [vmem:[%s1218_s6] sm:$0xf]  ;;  %v487_v32 = vld [vmem:[%s1215_s3 + $0x8] sm:$0xff]  ;;  %v672_v49 = vsub.s32 0, %v671_v48  ;;  %s946_s28 = scalar_lea.vmem %s772_s23, 16  ;;  %p953_p2 = scmp.lt.s32.totalorder %s772_s23, %s951_s10 }
  0x27   : > { %v486_v15 = vld [vmem:[%s1215_s3] sm:$0xff]  ;;  %883 = vmatprep.subr.mxu0 %v1009_v33  ;;  %p947_p13 = scmp.ne.s32.totalorder %s772_s23, %s946_s28  ;;  %p954_p3 = scmp.lt.s32.totalorder %s952_s8, %s946_s28 }
  0x28   : > { %402 = vperm.xlu0 %937, %v388_v9   ;;  %880 = vmatprep.mubr.msk.f32.mxu1 %vm500_vm1, %v486_v15  ;;  %v582_v40 = vld [vmem:[%s1217_s5] sm:$0xf] }
  0x29   : > { %869 = vmatmul.mubr.msk.bf16.vlgmr.msra.gmra.mxu0 %vm426_vm0, %v941_v8  ;;  %392 = vperm.xlu1 %938, %v386_v10   ;;  %v663_v46 = vld [vmem:[%s1219_s7] sm:$0x1]  ;;  %p948_p0 = pnand %p947_p13, %p1103_p6  ;;  %p955_p4 = por %p954_p3, %p953_p2 }
  0x2a   : > { %887 = vmatprep.mubr.msk.f32.mxu0 %vm1010_vm2, %v1009_v33 }
  0x2b   : > { %p949_p1 = pneg %p948_p0 }
  0x2c   : > { %497 = vperm.xlu0 %937, %v489_v11  }
  0x2d   : > { %492 = vperm.xlu1 %938, %v488_v12   ;;  %p956_p5 = pnand %p955_p4, %p949_p1 }
  0x30   : > { %586 = vperm.xlu0 %937, %v583_v13  }
  0x31   : > { %667 = vperm.xlu1 %938, %v664_v14  }
  0x9f   : > { %v408_v16 = vpop.permute.xlu0 %407 }
  0xa0   : > { %v398_v18 = vpop.permute.xlu1 %397 }
  0xa3   : > { %v403_v20 = vpop.permute.xlu0 %402 }
  0xa4   : > { %v393_v27 = vpop.permute.xlu1 %392 }
  0xa7   : > { %v498_v34 = vpop.permute.xlu0 %497 }
  0xa8   : > { %v493_v37 = vpop.permute.xlu1 %492 }
  0xab   : > { %v587_v41 = vpop.permute.xlu0 %586 }
  0xac   : > { %v668_v50 = vpop.permute.xlu1 %667 }
  0xad   : > { %v673_v51 = vrot.slane %v668_v50, %v672_v49 }
  0xe9   : > { %v870_v17 = vpop.f32.mrf.mxu0 }
  0xea   : > { %v476_v22 = vadd.f32 %v870_v17, %v403_v20 }
  0xeb   : > { %v467_v19 = vpop.f32.mrf.mxu0 }
  0xec   : > { %v484_v28 = vmax.f32 %v476_v22, 0.0  ;;  %v468_v29 = vadd.f32 %v467_v19, %v393_v27 }
  0xed   : > { %v871_v21 = vpop.f32.mrf.mxu0 }
  0xee   : > { %v479_v23 = vadd.f32 %v871_v21, %v408_v16  ;;  %v482_v31 = vmax.f32 %v468_v29, 0.0 }
  0xef   : > { %v470_v24 = vpop.f32.mrf.mxu0 }
  0xf0   : > { %v485_v25 = vmax.f32 %v479_v23, 0.0  ;;  %v471_v26 = vadd.f32 %v470_v24, %v398_v18 }
  0xf2   : > { %872 = vmatprep.subr.mxu1 %v485_v25  ;;  %v483_v30 = vmax.f32 %v471_v26, 0.0 }
  0xf3   : > { %873 = vmatpush3.msra.mxu1 %v485_v25 }
  0xf4   : > { %874 = vmatprep.subr.mxu1 %v484_v28 }
  0xf5   : > { %875 = vmatpush3.msra.mxu1 %v484_v28 }
  0xf6   : > { %876 = vmatprep.subr.mxu1 %v483_v30 }
  0xf7   : > { %877 = vmatpush3.msra.mxu1 %v483_v30 }
  0xf8   : > { %878 = vmatprep.subr.mxu1 %v482_v31 }
  0xf9   : > { %879 = vmatpush3.msra.mxu1 %v482_v31 }
  0xfa   : > { %881 = vmatmul.mubr.msk.f32.vlgmr.msra.gmra.mxu1 %vm500_vm1, %v487_v32  ;;  %890 = vmatprep.subr.mxu1 %v1009_v33 }
  0xfb   : > { %892 = vmatprep.mubr.msk.f32.mxu1 %vm1010_vm2, %v1009_v33 }
 0x1ba   : > { %v882_v35 = vpop.f32.mrf.mxu1 }
 0x1bb   : > { %v579_v36 = vadd.f32 %v882_v35, %v498_v34 }
 0x1bc   : > { %v573_v38 = vpop.f32.mrf.mxu1 }
 0x1bd   : > { %v574_v39 = vadd.f32 %v573_v38, %v493_v37  ;;  %884 = vmatpush3.msra.mxu0 %v579_v36 }
 0x1be   : > { %885 = vmatprep.subr.mxu0 %v1009_v33 }
 0x1bf   : > { %886 = vmatpush3.msra.mxu0 %v574_v39 }
 0x1c0   : > { %888 = vmatmul.mubr.msk.f32.vlgmr.msra.gmra.mxu0 %vm426_vm0, %v582_v40 }
 0x280   : > { %v658_v42 = vpop.f32.mrf.mxu0 }
 0x281   : > { %v659_v43 = vadd.f32 %v658_v42, %v587_v41 }
 0x282   : > { %v889_v44 = vpop.f32.mrf.mxu0 }
 0x283   : > { %v662_v45 = vmax.f32 %v659_v43, 0.0 }
 0x285   : > { %891 = vmatpush3.msk.msra.mxu1 %vm678_vm3, %v662_v45 }
 0x286   : > { %893 = vmatmul.mubr.msk.f32.vlgmr.msra.gmra.mxu1 %vm674_vm4, %v663_v46 }
 0x346   : > { %v748_v52 = vpop.f32.mrf.mxu1 }
 0x347   : > { %v749_v53 = vadd.f32 %v748_v52, %v673_v51 }
 0x348   : > { %v894_v54 = vpop.f32.mrf.mxu1 }
 0x349   : > { %v752_v55 = vsub.f32 0.0, %v749_v53 }
 0x34b   : > { %v753_v56 = vmul.f32 1.442695, %v752_v55 }
 0x34d   : > { %942 = vpow2.f32 %v753_v56 }
 0x35a   : > { %v943_v57 = vpop.eup %942 }
 0x35b   : > { %v755_v58 = vadd.f32 1.0, %v943_v57 }
 0x35d   : > { %944 = vrcp.f32 %v755_v58 }
 0x36a   : > { %v945_v59 = vpop.eup %944 }
 0x36b   : > { %757 = vst [vmem:[%s378_s22] sm:$0x1] %v945_v59 }
 0x36c   : > { %959 = shalt.err (!%p956_p5)
}
 0x36d   : > { %s960_s15 = scalar_lea.hbm %s1175_s26, 16  ;;  %s964_s18 = scalar_lea.hbm %s1221_s9, 32 }
 0x36e   : > { %p961_p7 = scmp.ne.s32.totalorder %s1175_s26, %s960_s15  ;;  %p965_p12 = scmp.lt.s32.totalorder %s1175_s26, %s1221_s9 }
 0x36f   : > { %p966_p13 = scmp.lt.s32.totalorder %s964_s18, %s960_s15 }
 0x370   : > { %p962_p10 = pnand %p961_p7, %p1103_p6 }
 0x371   : > { %p967_p0 = por %p966_p13, %p965_p12 }
 0x372   : > { %p963_p11 = pneg %p962_p10 }
 0x374   : > { %p968_p1 = pnand %p967_p0, %p963_p11 }
 0x376   : > { %971 = shalt.err (!%p968_p1)
}
 0x377   : > { %895 = dma.vmem_to_hbm [thread:$0]  (%p1103_p6), %s772_s23, 16, %s1175_s26, %s759_s27  }
 0x378 PF: > { %s783_s25 = sand.u32 1, %s994_s11   ;;  %p898_p2 = pnand %p834_p9, %p1107_p8 }
 0x379   : > { %s784_s28 = scalar_lea.sflag [#allocation5], %s783_s25 }
 0x37a   : > { %p899_p3 = pneg %p898_p2 }
 0x37c   : > { %989 = dma.done.wait (%p899_p3), %s784_s28, 16  }
 0x37d   : > { %991 = vsyncadd (%p899_p3), %s784_s28, 4294967280  ;;  %p21_p4 = scmp.ge.s32.totalorder %s1088_s16, 4   ;;  %s1224_s11 = smov %s998_s12 }
 0x37e   : > { %s1225_s12 = smov %s1002_s13  ;;  %s1226_s13 = smov %s1101_s19 }
 0x37f   : > { %s1227_s14 = smov %s1088_s16  ;;  %23 = sbr.rel (!%p21_p4) target bundleno = 6 (0x6), region = 137 }
 0x384   :  { %788 = vsyncpa [#allocation5], 1 }
 0x385   :  { %790 = vsyncpa [#allocation5 + $0x1], 1 }

</bundles_post_ra>
